<compile_context>
chip_gen: v6e
topology: v6e:2x2x1
jax: 0.10.0
libtpu: 0.0.40
codegen_flags: <defaults>
</compile_context>

<pallas_src>
import jax
import jax.numpy as jnp
from jax.experimental import pallas as pl
from jax.experimental.pallas import tpu as pltpu

_HIDDEN = 128
_LANE = 128
_MAX_BLK = 4096          # cap: keeps intermediates comfortably inside v7x VMEM


def _round_up(n, m):
    return ((n + m - 1) // m) * m


def ppo_actor_kernel(x_ref, w1_ref, b1_ref, w2_ref, b2_ref, w3_ref, b3_ref, o_ref):
    """Fused MLP + softmax on one (features, blk) batch tile (batch on lanes).

    x_ref  : (state_dim, blk)   bf16/f32
    w*_ref : PyTorch (out, in) layout, resident in VMEM across the grid
    b*_ref : (out, 1)
    o_ref  : (action_dim, blk)  f32 probabilities
    """
    x = x_ref[...]                                   # already compute dtype

    # Layer 1: Linear + ReLU  (MXU, f32 accumulate)
    h1 = jnp.dot(w1_ref[...], x, preferred_element_type=jnp.float32) + b1_ref[...]
    h1 = jnp.maximum(h1, 0.0)

    # Layer 2: Linear + ReLU
    h2 = jnp.dot(w2_ref[...], h1.astype(w2_ref.dtype),
                 preferred_element_type=jnp.float32) + b2_ref[...]
    h2 = jnp.maximum(h2, 0.0)

    # Layer 3: Linear -> logits (action_dim rows, batch on lanes)
    logits = jnp.dot(w3_ref[...], h2.astype(w3_ref.dtype),
                     preferred_element_type=jnp.float32) + b3_ref[...]

    # Numerically stable softmax over the feature (sublane) axis.
    m = jnp.max(logits, axis=0, keepdims=True)
    e = jnp.exp(logits - m)
    inv = pl.reciprocal(jnp.sum(e, axis=0, keepdims=True), approx=True)
    o_ref[...] = (e * inv).astype(o_ref.dtype)


def _plan_batch(batch, block_b):
    """Pick (blk, b_pad, steps): blk multiple of 128 lanes, >=2 steps when
    the batch allows it (so both v7x TensorCores get work), minimal padding."""
    block_b = max(_LANE, min(int(block_b), _MAX_BLK))
    steps = max(1, pl.cdiv(batch, block_b))
    if steps == 1 and batch >= 2 * _LANE:
        steps = 2
    blk = _round_up(pl.cdiv(batch, steps), _LANE)
    b_pad = steps * blk
    return blk, b_pad, steps


def _vmem_limit_bytes(k, hidden, a, blk, in_itemsize):
    x_tiles = 2 * k * blk * in_itemsize                     # double-buffered input
    out_tiles = 2 * a * blk * 4                             # double-buffered output
    weights = (k * hidden + hidden * hidden + hidden * a) * in_itemsize \
              + (2 * hidden + a) * 4
    interm = 6 * hidden * blk * 4                           # h1/h2 + casts, headroom
    est = x_tiles + out_tiles + weights + interm + (4 << 20)
    return int(min(max(est, 16 << 20), 48 << 20))


def ppo_actor_forward(x, params, *, block_b=2048, use_bf16=True):
    """x: (B, state_dim) float32. Returns (B, action_dim) softmax probs."""
    B, state_dim = x.shape
    w1, b1, w2, b2, w3, b3 = params
    hidden = w1.shape[0]
    action_dim = w3.shape[0]

    compute_dtype = jnp.bfloat16 if use_bf16 else jnp.float32
    in_itemsize = jnp.dtype(compute_dtype).itemsize

    if use_bf16:
        w1 = w1.astype(compute_dtype)
        w2 = w2.astype(compute_dtype)
        w3 = w3.astype(compute_dtype)

    blk, b_pad, steps = _plan_batch(B, block_b)

    # Single fused pass over x: transpose (batch -> lanes), pad, cast.
    xT = x.T
    if b_pad != B:
        xT = jnp.pad(xT, ((0, 0), (0, b_pad - B)))
    xT = xT.astype(compute_dtype)                            # (state_dim, b_pad)

    def stream(i):      # x / out tiles stream along the (lane-axis) batch
        return (0, i)

    def resident(i):    # weights / biases stay on the same block every step
        return (0, 0)

    flops = 2 * b_pad * (state_dim * hidden + hidden * hidden + hidden * action_dim)
    transcendentals = b_pad * (action_dim + 1)               # exp + reciprocal
    bytes_accessed = (state_dim * b_pad * in_itemsize
                      + action_dim * b_pad * 4
                      + (state_dim * hidden + hidden * hidden + hidden * action_dim)
                      * in_itemsize
                      + (2 * hidden + action_dim) * 4)

    out = pl.pallas_call(
        ppo_actor_kernel,
        out_shape=jax.ShapeDtypeStruct((action_dim, b_pad), jnp.float32),
        grid=(steps,),
        in_specs=[
            pl.BlockSpec((state_dim, blk), stream),
            pl.BlockSpec((hidden, state_dim), resident),
            pl.BlockSpec((hidden, 1), resident),
            pl.BlockSpec((hidden, hidden), resident),
            pl.BlockSpec((hidden, 1), resident),
            pl.BlockSpec((action_dim, hidden), resident),
            pl.BlockSpec((action_dim, 1), resident),
        ],
        out_specs=pl.BlockSpec((action_dim, blk), stream),
        compiler_params=pltpu.CompilerParams(
            dimension_semantics=("parallel",),   # shard batch tiles across TCs
            vmem_limit_bytes=_vmem_limit_bytes(state_dim, hidden, action_dim,
                                               blk, in_itemsize),
        ),
        cost_estimate=pl.CostEstimate(flops=flops,
                                      transcendentals=transcendentals,
                                      bytes_accessed=bytes_accessed),
    )(xT, w1, b1, w2, b2, w3, b3)

    # Back to (B, action_dim); tiny slice+transpose (action_dim * 4 B/row).
    return out[:, :B].T


def init_params(key, state_dim, action_dim, hidden=_HIDDEN):
    """Deterministic synthetic parameters, PyTorch Linear layout (out, in)."""
    k1, k2, k3, k4, k5, k6 = jax.random.split(key, 6)

    def lin(kw, kb, fan_in, fan_out):
        bound = float(fan_in) ** -0.5
        w = jax.random.uniform(kw, (fan_out, fan_in), jnp.float32, -bound, bound)
        b = jax.random.uniform(kb, (fan_out, 1), jnp.float32, -bound, bound)
        return w, b

    w1, b1 = lin(k1, k2, state_dim, hidden)
    w2, b2 = lin(k3, k4, hidden, hidden)
    w3, b3 = lin(k5, k6, hidden, action_dim)
    return (w1, b1, w2, b2, w3, b3)


def ppo_actor_ref(x, params):
    """Pure-JAX reference (mirrors PyTorch: y = x @ W.T + b)."""
    w1, b1, w2, b2, w3, b3 = params
    h1 = jnp.maximum(x @ w1.T + b1[:, 0], 0.0)
    h2 = jnp.maximum(h1 @ w2.T + b2[:, 0], 0.0)
    logits = h2 @ w3.T + b3[:, 0]
    return jax.nn.softmax(logits, axis=-1)


if __name__ == "__main__":
    key = jax.random.PRNGKey(0)
    k_params, k_x, k_x2 = jax.random.split(key, 3)

    batch = 2
    state_dim = 8
    action_dim = 4

    params = init_params(k_params, state_dim, action_dim)
    x = jax.random.normal(k_x, (batch, state_dim), dtype=jnp.float32)
    ref = ppo_actor_ref(x, params)

    # Small-batch path, default bf16 MXU operands (single grid step).
    probs = jax.block_until_ready(ppo_actor_forward(x, params))
    assert probs.shape == (batch, action_dim)
    assert jnp.allclose(probs, ref, atol=3e-2, rtol=3e-2)
    assert jnp.allclose(jnp.sum(probs, axis=-1), 1.0, atol=5e-3)

    # f32-operand path (tighter tolerance).
    probs_f32 = jax.block_until_ready(ppo_actor_forward(x, params, use_bf16=False))
    assert jnp.allclose(probs_f32, ref, atol=2e-3, rtol=2e-3)
    assert jnp.allclose(jnp.sum(probs_f32, axis=-1), 1.0, atol=5e-3)

    # Batch-tiled path: multiple grid steps + ragged final tile (padded lanes).
    B2 = 300
    x2 = jax.random.normal(k_x2, (B2, state_dim), dtype=jnp.float32)
    ref2 = ppo_actor_ref(x2, params)

    probs2 = jax.block_until_ready(ppo_actor_forward(x2, params, block_b=128))
    assert probs2.shape == (B2, action_dim)
    assert jnp.allclose(probs2, ref2, atol=3e-2, rtol=3e-2)
    assert jnp.allclose(jnp.sum(probs2, axis=-1), 1.0, atol=5e-3)

    probs2_f32 = jax.block_until_ready(
        ppo_actor_forward(x2, params, block_b=128, use_bf16=False))
    assert jnp.allclose(probs2_f32, ref2, atol=2e-3, rtol=2e-3)
    assert jnp.allclose(jnp.sum(probs2_f32, axis=-1), 1.0, atol=5e-3)

    print("KERNEL_OK")
</pallas_src>

<mosaic_0001>
module attributes {stable_mosaic.version = 11 : i64} {
  func.func @ppo_actor_kernel(%arg0: i32, %arg1: memref<8x128xbf16, #tpu.memory_space<vmem>>, %arg2: memref<128x8xbf16, #tpu.memory_space<vmem>>, %arg3: memref<128x1xf32, #tpu.memory_space<vmem>>, %arg4: memref<128x128xbf16, #tpu.memory_space<vmem>>, %arg5: memref<128x1xf32, #tpu.memory_space<vmem>>, %arg6: memref<4x128xbf16, #tpu.memory_space<vmem>>, %arg7: memref<4x1xf32, #tpu.memory_space<vmem>>, %arg8: memref<4x128xf32, #tpu.memory_space<vmem>>) attributes {dimension_semantics = [#tpu.dimension_semantics<parallel>], iteration_bounds = array<i64: 1>, scalar_prefetch = 0 : i64, scratch_operands = 0 : i64, tpu.core_type = #tpu.core_type<tc>, window_params = [{transform_indices = @transform_0, window_bounds = array<i64: 8, 128>}, {pipeline_mode = #tpu.pipeline_mode<synchronous>, transform_indices = @transform_1, window_bounds = array<i64: 128, 8>}, {pipeline_mode = #tpu.pipeline_mode<synchronous>, transform_indices = @transform_2, window_bounds = array<i64: 128, 1>}, {pipeline_mode = #tpu.pipeline_mode<synchronous>, transform_indices = @transform_3, window_bounds = array<i64: 128, 128>}, {pipeline_mode = #tpu.pipeline_mode<synchronous>, transform_indices = @transform_4, window_bounds = array<i64: 128, 1>}, {pipeline_mode = #tpu.pipeline_mode<synchronous>, transform_indices = @transform_5, window_bounds = array<i64: 4, 128>}, {pipeline_mode = #tpu.pipeline_mode<synchronous>, transform_indices = @transform_6, window_bounds = array<i64: 4, 1>}, {transform_indices = @transform_7, window_bounds = array<i64: 4, 128>}]} {
    %c0 = arith.constant 0 : index
    %c0_0 = arith.constant 0 : index
    %0 = vector.load %arg1[%c0, %c0_0] : memref<8x128xbf16, #tpu.memory_space<vmem>>, vector<8x128xbf16>
    %c0_1 = arith.constant 0 : index
    %c0_2 = arith.constant 0 : index
    %1 = vector.load %arg2[%c0_1, %c0_2] : memref<128x8xbf16, #tpu.memory_space<vmem>>, vector<128x8xbf16>
    %cst = arith.constant dense<0.000000e+00> : vector<128x128xf32>
    %2 = tpu.matmul %1, %0, %cst {dimension_numbers = #tpu.dot_dimension_numbers<[1], [0], [0], [1], [0, 0, 1, 1], [], []>} : vector<128x8xbf16>, vector<8x128xbf16>, vector<128x128xf32> -> vector<128x128xf32>
    %c0_3 = arith.constant 0 : index
    %c0_4 = arith.constant 0 : index
    %3 = vector.load %arg3[%c0_3, %c0_4] : memref<128x1xf32, #tpu.memory_space<vmem>>, vector<128x1xf32>
    %4 = vector.broadcast %3 : vector<128x1xf32> to vector<128x128xf32>
    %5 = arith.addf %2, %4 : vector<128x128xf32>
    %cst_5 = arith.constant 0.000000e+00 : f32
    %6 = vector.broadcast %cst_5 : f32 to vector<128x128xf32>
    %7 = arith.maximumf %5, %6 : vector<128x128xf32>
    %c0_6 = arith.constant 0 : index
    %c0_7 = arith.constant 0 : index
    %8 = vector.load %arg4[%c0_6, %c0_7] : memref<128x128xbf16, #tpu.memory_space<vmem>>, vector<128x128xbf16>
    %9 = arith.truncf %7 : vector<128x128xf32> to vector<128x128xbf16>
    %cst_8 = arith.constant dense<0.000000e+00> : vector<128x128xf32>
    %10 = tpu.matmul %8, %9, %cst_8 {dimension_numbers = #tpu.dot_dimension_numbers<[1], [0], [0], [1], [0, 0, 1, 1], [], []>} : vector<128x128xbf16>, vector<128x128xbf16>, vector<128x128xf32> -> vector<128x128xf32>
    %c0_9 = arith.constant 0 : index
    %c0_10 = arith.constant 0 : index
    %11 = vector.load %arg5[%c0_9, %c0_10] : memref<128x1xf32, #tpu.memory_space<vmem>>, vector<128x1xf32>
    %12 = vector.broadcast %11 : vector<128x1xf32> to vector<128x128xf32>
    %13 = arith.addf %10, %12 : vector<128x128xf32>
    %cst_11 = arith.constant 0.000000e+00 : f32
    %14 = vector.broadcast %cst_11 : f32 to vector<128x128xf32>
    %15 = arith.maximumf %13, %14 : vector<128x128xf32>
    %c0_12 = arith.constant 0 : index
    %c0_13 = arith.constant 0 : index
    %16 = vector.load %arg6[%c0_12, %c0_13] : memref<4x128xbf16, #tpu.memory_space<vmem>>, vector<4x128xbf16>
    %17 = arith.truncf %15 : vector<128x128xf32> to vector<128x128xbf16>
    %cst_14 = arith.constant dense<0.000000e+00> : vector<4x128xf32>
    %18 = tpu.matmul %16, %17, %cst_14 {dimension_numbers = #tpu.dot_dimension_numbers<[1], [0], [0], [1], [0, 0, 1, 1], [], []>} : vector<4x128xbf16>, vector<128x128xbf16>, vector<4x128xf32> -> vector<4x128xf32>
    %c0_15 = arith.constant 0 : index
    %c0_16 = arith.constant 0 : index
    %19 = vector.load %arg7[%c0_15, %c0_16] : memref<4x1xf32, #tpu.memory_space<vmem>>, vector<4x1xf32>
    %20 = vector.broadcast %19 : vector<4x1xf32> to vector<4x128xf32>
    %21 = arith.addf %18, %20 : vector<4x128xf32>
    %cst_17 = arith.constant dense<0xFF800000> : vector<128xf32>
    %22 = vector.multi_reduction <maximumf>, %21, %cst_17 [0] : vector<4x128xf32> to vector<128xf32>
    %23 = vector.shape_cast %22 : vector<128xf32> to vector<1x128xf32>
    %24 = vector.broadcast %23 : vector<1x128xf32> to vector<4x128xf32>
    %25 = arith.subf %21, %24 : vector<4x128xf32>
    %26 = math.exp %25 : vector<4x128xf32>
    %cst_18 = arith.constant dense<0.000000e+00> : vector<128xf32>
    %27 = vector.multi_reduction <add>, %26, %cst_18 [0] : vector<4x128xf32> to vector<128xf32>
    %28 = vector.shape_cast %27 : vector<128xf32> to vector<1x128xf32>
    %29 = tpu.reciprocal %28 {approx = true} : vector<1x128xf32> -> vector<1x128xf32>
    %30 = vector.broadcast %29 : vector<1x128xf32> to vector<4x128xf32>
    %31 = arith.mulf %26, %30 : vector<4x128xf32>
    %c0_19 = arith.constant 0 : index
    %c0_20 = arith.constant 0 : index
    %32 = vector.load %arg8[%c0_19, %c0_20] : memref<4x128xf32, #tpu.memory_space<vmem>>, vector<4x128xf32>
    tpu.vector_store %arg8[%c0_19, %c0_20], %31 {strides = array<i32>} : memref<4x128xf32, #tpu.memory_space<vmem>>, vector<4x128xf32>,
    return
  }
  func.func @transform_0(%arg0: i32) -> (i32, i32) {
    %c0_i32 = arith.constant 0 : i32
    %c0_i32_0 = arith.constant 0 : i32
    return %c0_i32, %arg0 : i32, i32
  }
  func.func @transform_1(%arg0: i32) -> (i32, i32) {
    %c0_i32 = arith.constant 0 : i32
    %c0_i32_0 = arith.constant 0 : i32
    %c0_i32_1 = arith.constant 0 : i32
    return %c0_i32, %c0_i32_0 : i32, i32
  }
  func.func @transform_2(%arg0: i32) -> (i32, i32) {
    %c0_i32 = arith.constant 0 : i32
    %c0_i32_0 = arith.constant 0 : i32
    %c0_i32_1 = arith.constant 0 : i32
    return %c0_i32, %c0_i32_0 : i32, i32
  }
  func.func @transform_3(%arg0: i32) -> (i32, i32) {
    %c0_i32 = arith.constant 0 : i32
    %c0_i32_0 = arith.constant 0 : i32
    %c0_i32_1 = arith.constant 0 : i32
    return %c0_i32, %c0_i32_0 : i32, i32
  }
  func.func @transform_4(%arg0: i32) -> (i32, i32) {
    %c0_i32 = arith.constant 0 : i32
    %c0_i32_0 = arith.constant 0 : i32
    %c0_i32_1 = arith.constant 0 : i32
    return %c0_i32, %c0_i32_0 : i32, i32
  }
  func.func @transform_5(%arg0: i32) -> (i32, i32) {
    %c0_i32 = arith.constant 0 : i32
    %c0_i32_0 = arith.constant 0 : i32
    %c0_i32_1 = arith.constant 0 : i32
    return %c0_i32, %c0_i32_0 : i32, i32
  }
  func.func @transform_6(%arg0: i32) -> (i32, i32) {
    %c0_i32 = arith.constant 0 : i32
    %c0_i32_0 = arith.constant 0 : i32
    %c0_i32_1 = arith.constant 0 : i32
    return %c0_i32, %c0_i32_0 : i32, i32
  }
  func.func @transform_7(%arg0: i32) -> (i32, i32) {
    %c0_i32 = arith.constant 0 : i32
    %c0_i32_0 = arith.constant 0 : i32
    return %c0_i32, %arg0 : i32, i32
  }
}

</mosaic_0001>

<bundles_post_ra>
// kernel: tpu_custom_call.1
= control target key start
LH: loop header
LB: loop body
LE: loop exit
PB: predicated region body
PF: predicated region fallthrough
CT: control target
= control target key end

     0   :  { %vm206_vm0 = vcmask 1043456   ;;  %vm181_vm1 = vcmask 64512   ;;  %v870_v5 = vmov 0   ;;  %s1109_s0 = inlined_call_operand.vmem [shape: bf16[8,128], index: 0, kind: input, shape index: {}]   ;;  %s1110_s1 = inlined_call_operand.vmem [shape: bf16[128,8], index: 1, kind: input, shape index: {}]   ;;  %s1111_s2 = inlined_call_operand.vmem [shape: f32[128,1], index: 2, kind: input, shape index: {}]   ;;  %s1112_s3 = inlined_call_operand.vmem [shape: bf16[128,128], index: 3, kind: input, shape index: {}]   ;;  %s1113_s4 = inlined_call_operand.vmem [shape: f32[128,1], index: 4, kind: input, shape index: {}]   ;;  %s1114_s5 = inlined_call_operand.vmem [shape: bf16[4,128], index: 5, kind: input, shape index: {}]   ;;  %s1115_s6 = inlined_call_operand.vmem [shape: f32[4,1], index: 6, kind: input, shape index: {}]   ;;  %s1116_s7 = inlined_call_operand.hbm [shape: f32[4,128], index: 7, kind: output, shape index: {}]  }
   0x1   :  { %v28_v0 = vld [vmem:[%s1109_s0] sm:$0xf]  ;;  %v829_v3 = vld [vmem:[%s1110_s1 + $0x8] sm:$0xff]   ;;  %v830_v4 = vld [vmem:[%s1110_s1 + $0x10] sm:$0xff]   ;;  %826 = vset.pattern.permute.xlu0 %v870_v5  ;;  %827 = vset.pattern.permute.xlu1 %v870_v5 }
   0x2   :  { %v828_v1 = vld [vmem:[%s1110_s1] sm:$0xff]   ;;  %821 = vmatprep.subr.msk.bf16.mxu0 %vm206_vm0, %v28_v0  ;;  %v208_v2 = vsel %vm206_vm0, %v28_v0, 0  ;;  %v59_v6 = vld [vmem:[%s1111_s2 + $0x70] sm:$0xff]  ;;  %v831_v7 = vld [vmem:[%s1110_s1 + $0x18] sm:$0xff]  }
   0x3   :  { %752 = vmatpush3.bf16.msra.mxu0 %v208_v2  ;;  %753 = vmatprep.mubr.msk.bf16.mxu0 %vm181_vm1, %v828_v1  ;;  %v57_v8 = vld [vmem:[%s1111_s2 + $0x60] sm:$0xff]  ;;  %v60_v10 = vld [vmem:[%s1111_s2 + $0x78] sm:$0xff]  ;;  %v58_v11 = vld [vmem:[%s1111_s2 + $0x68] sm:$0xff] }
   0x4   :  { %133 = vperm.xlu0 %826, %v59_v6   ;;  %v832_v9 = vld [vmem:[%s1110_s1 + $0x20] sm:$0xff]   ;;  %123 = vperm.xlu1 %827, %v57_v8   ;;  %v55_v12 = vld [vmem:[%s1111_s2 + $0x50] sm:$0xff]  ;;  %v56_v13 = vld [vmem:[%s1111_s2 + $0x58] sm:$0xff] }
   0x5   :  { %v833_v14 = vld [vmem:[%s1110_s1 + $0x28] sm:$0xff]   ;;  %v834_v15 = vld [vmem:[%s1110_s1 + $0x30] sm:$0xff]   ;;  %v53_v16 = vld [vmem:[%s1111_s2 + $0x40] sm:$0xff] }
   0x6   :  { %754 = vmatmul.mubr.msk.bf16.vlgmr.msra.gmra.mxu0 %vm181_vm1, %v829_v3  ;;  %v54_v17 = vld [vmem:[%s1111_s2 + $0x48] sm:$0xff]  ;;  %v51_v18 = vld [vmem:[%s1111_s2 + $0x30] sm:$0xff]  ;;  %v52_v19 = vld [vmem:[%s1111_s2 + $0x38] sm:$0xff] }
   0x7   :  { %757 = vmatprep.mubr.msk.bf16.mxu0 %vm181_vm1, %v830_v4  ;;  %v835_v20 = vld [vmem:[%s1110_s1 + $0x38] sm:$0xff]  }
   0x8   :  { %138 = vperm.xlu0 %826, %v60_v10   ;;  %128 = vperm.xlu1 %827, %v58_v11  }
   0xc   :  { %113 = vperm.xlu0 %826, %v55_v12   ;;  %118 = vperm.xlu1 %827, %v56_v13  }
   0xe   :  { %758 = vmatmul.mubr.msk.bf16.gmra.mxu0 %vm181_vm1, %v831_v7 }
   0xf   :  { %761 = vmatprep.mubr.msk.bf16.mxu0 %vm181_vm1, %v832_v9 }
  0x10   :  { %103 = vperm.xlu0 %826, %v53_v16   ;;  %108 = vperm.xlu1 %827, %v54_v17  }
  0x14   :  { %93 = vperm.xlu0 %826, %v51_v18  }
  0x16   :  { %762 = vmatmul.mubr.msk.bf16.gmra.mxu0 %vm181_vm1, %v833_v14 }
  0x17   :  { %765 = vmatprep.mubr.msk.bf16.mxu0 %vm181_vm1, %v834_v15 }
  0x18   :  { %12 = vsyncpa [#allocation3], 0  ;;  %v49_v21 = vld [vmem:[%s1111_s2 + $0x20] sm:$0xff]  ;;  %98 = vperm.xlu1 %827, %v52_v19   ;;  %v50_v22 = vld [vmem:[%s1111_s2 + $0x28] sm:$0xff]  ;;  %vm872_vm2 = vmmov 0  }
  0x19   :  { %83 = vperm.xlu0 %826, %v49_v21   ;;  %v47_v23 = vld [vmem:[%s1111_s2 + $0x10] sm:$0xff]  ;;  %v48_v24 = vld [vmem:[%s1111_s2 + $0x18] sm:$0xff]  ;;  %v45_v25 = vld [vmem:[%s1111_s2] sm:$0xff] }
  0x1a   :  { %v46_v26 = vld [vmem:[%s1111_s2 + $0x8] sm:$0xff]  ;;  %v361_v27 = vld [vmem:[%s1113_s4 + $0x70] sm:$0xff]  ;;  %v362_v28 = vld [vmem:[%s1113_s4 + $0x78] sm:$0xff] }
  0x1b   :  { %v359_v29 = vld [vmem:[%s1113_s4 + $0x60] sm:$0xff]  ;;  %v360_v30 = vld [vmem:[%s1113_s4 + $0x68] sm:$0xff]  ;;  %v357_v31 = vld [vmem:[%s1113_s4 + $0x50] sm:$0xff] }
  0x1c   :  { %88 = vperm.xlu1 %827, %v50_v22   ;;  %v358_v32 = vld [vmem:[%s1113_s4 + $0x58] sm:$0xff]  ;;  %v355_v33 = vld [vmem:[%s1113_s4 + $0x40] sm:$0xff]  ;;  %v356_v34 = vld [vmem:[%s1113_s4 + $0x48] sm:$0xff] }
  0x1d   :  { %73 = vperm.xlu0 %826, %v47_v23   ;;  %v353_v35 = vld [vmem:[%s1113_s4 + $0x30] sm:$0xff]  ;;  %v354_v36 = vld [vmem:[%s1113_s4 + $0x38] sm:$0xff]  ;;  %v351_v37 = vld [vmem:[%s1113_s4 + $0x20] sm:$0xff] }
  0x1e   :  { %766 = vmatmul.mubr.msk.bf16.gmra.mxu0 %vm181_vm1, %v835_v20  ;;  %v352_v38 = vld [vmem:[%s1113_s4 + $0x28] sm:$0xff]  ;;  %v349_v39 = vld [vmem:[%s1113_s4 + $0x10] sm:$0xff]  ;;  %v350_v40 = vld [vmem:[%s1113_s4 + $0x18] sm:$0xff] }
  0x1f   :  { %v347_v41 = vld [vmem:[%s1113_s4] sm:$0xff]  ;;  %v348_v42 = vld [vmem:[%s1113_s4 + $0x8] sm:$0xff] }
  0x20   :  { %78 = vperm.xlu1 %827, %v48_v24   ;;  %v613_v43 = vld [vmem:[%s1115_s6] sm:$0xf] }
  0x21   :  { %63 = vperm.xlu0 %826, %v45_v25   ;;  %v836_v44 = vld [vmem:[%s1112_s3] sm:$0xff]  }
  0x22   :  { %785 = vmatprep.mubr.bf16.mxu1 %v836_v44 }
  0x24   :  { %68 = vperm.xlu1 %827, %v46_v26  }
  0x25   :  { %435 = vperm.xlu0 %826, %v361_v27  }
  0x28   :  { %440 = vperm.xlu1 %827, %v362_v28  }
  0x29   :  { %425 = vperm.xlu0 %826, %v359_v29  }
  0x2c   :  { %430 = vperm.xlu1 %827, %v360_v30  }
  0x2d   :  { %415 = vperm.xlu0 %826, %v357_v31  }
  0x30   :  { %420 = vperm.xlu1 %827, %v358_v32  }
  0x31   :  { %405 = vperm.xlu0 %826, %v355_v33  }
  0x34   :  { %410 = vperm.xlu1 %827, %v356_v34  }
  0x35   :  { %395 = vperm.xlu0 %826, %v353_v35  }
  0x38   :  { %400 = vperm.xlu1 %827, %v354_v36  }
  0x39   :  { %385 = vperm.xlu0 %826, %v351_v37  }
  0x3c   :  { %390 = vperm.xlu1 %827, %v352_v38  }
  0x3d   :  { %375 = vperm.xlu0 %826, %v349_v39  }
  0x40   :  { %380 = vperm.xlu1 %827, %v350_v40  }
  0x41   :  { %365 = vperm.xlu0 %826, %v347_v41  }
  0x44   :  { %370 = vperm.xlu1 %827, %v348_v42  }
  0x45   :  { %616 = vperm.xlu0 %826, %v613_v43  }
  0x7f   :  { %v124_v49 = vpop.permute.xlu1 %123  ;;  %v134_v51 = vpop.permute.xlu0 %133 }
  0x83   :  { %v129_v54 = vpop.permute.xlu1 %128  ;;  %v139_v56 = vpop.permute.xlu0 %138 }
  0x87   :  { %v119_v59 = vpop.permute.xlu1 %118  ;;  %v114_v61 = vpop.permute.xlu0 %113 }
  0x8b   :  { %v109_v0 = vpop.permute.xlu1 %108  ;;  %v104_v3 = vpop.permute.xlu0 %103 }
  0x8f   :  { %v94_v17 = vpop.permute.xlu0 %93 }
  0x93   :  { %v99_v12 = vpop.permute.xlu1 %98 }
  0x94   :  { %v84_v27 = vpop.permute.xlu0 %83 }
  0x97   :  { %v89_v23 = vpop.permute.xlu1 %88 }
  0x98   :  { %v74_v36 = vpop.permute.xlu0 %73 }
  0x9b   :  { %v79_v33 = vpop.permute.xlu1 %78 }
  0x9f   :  { %v69_v42 = vpop.permute.xlu1 %68 }
  0xc6   :  { %v1053_v45 = vpop.f32.mrf.mxu0 }
  0xc7   :  { %v253_v40 = vadd.f32 %v1053_v45, %v74_v36  ;;  %v837_v45 = vld [vmem:[%s1112_s3 + $0x8] sm:$0xff]  }
  0xc8   :  { %v1055_v46 = vpop.f32.mrf.mxu0 }
  0xca   :  { %v756_v47 = vpop.f32.mrf.mxu0 }
  0xcb   :  { %v256_v37 = vadd.f32 %v756_v47, %v79_v33 }
  0xcc   :  { %v1057_v48 = vpop.f32.mrf.mxu0 }
  0xcd   :  { %v310_v43 = vmax.f32 %v256_v37, 0.0  ;;  %v248_v44 = vadd.f32 %v1057_v48, %v69_v42  ;;  %v838_v48 = vld [vmem:[%s1112_s3 + $0x10] sm:$0xff]  }
  0xce   :  { %v759_v50 = vpop.f32.mrf.mxu0 }
  0xcf   :  { %v269_v28 = vadd.f32 %v759_v50, %v94_v17  ;;  %v64_v50 = vpop.permute.xlu0 %63  ;;  %v308_v47 = vmax.f32 %v248_v44, 0.0 }
  0xd0   :  { %v260_v52 = vpop.f32.mrf.mxu0 }
  0xd1   :  { %v313_v34 = vmax.f32 %v269_v28, 0.0  ;;  %v261_v35 = vadd.f32 %v260_v52, %v84_v27  ;;  %v245_v52 = vadd.f32 %v1055_v46, %v64_v50  ;;  %v839_v46 = vld [vmem:[%s1112_s3 + $0x18] sm:$0xff]  }
  0xd2   :  { %v760_v53 = vpop.f32.mrf.mxu0 }
  0xd3   :  { %v272_v24 = vadd.f32 %v760_v53, %v99_v12  ;;  %v311_v41 = vmax.f32 %v261_v35, 0.0 }
  0xd4   :  { %v263_v55 = vpop.f32.mrf.mxu0 }
  0xd5   :  { %v314_v30 = vmax.f32 %v272_v24, 0.0  ;;  %v264_v31 = vadd.f32 %v263_v55, %v89_v23 }
  0xd6   :  { %v763_v57 = vpop.f32.mrf.mxu0 }
  0xd7   :  { %v285_v13 = vadd.f32 %v763_v57, %v114_v61  ;;  %v342_v38 = vpack.c.bf16 %v314_v30, %v313_v34  ;;  %v312_v39 = vmax.f32 %v264_v31, 0.0  ;;  %v841_v57 = vld [vmem:[%s1112_s3 + $0x28] sm:$0xff]  }
  0xd8   :  { %v276_v58 = vpop.f32.mrf.mxu0 }
  0xd9   :  { %v317_v21 = vmax.f32 %v285_v13, 0.0  ;;  %v277_v22 = vadd.f32 %v276_v58, %v104_v3  ;;  %v842_v58 = vld [vmem:[%s1112_s3 + $0x30] sm:$0xff]  }
  0xda   :  { %v764_v60 = vpop.f32.mrf.mxu0 }
  0xdb   :  { %v288_v8 = vadd.f32 %v764_v60, %v119_v59  ;;  %v315_v29 = vmax.f32 %v277_v22, 0.0  ;;  %v843_v59 = vld [vmem:[%s1112_s3 + $0x38] sm:$0xff]   ;;  %v871_v60 = vmov 0.0  }
  0xdc   :  { %v279_v62 = vpop.f32.mrf.mxu0  ;;  %801 = vmatprep.subr.bf16.mxu0 %v871_v60  ;;  %817 = vmatprep.mubr.msk.bf16.mxu0 %vm872_vm2, %v871_v60 }
  0xdd   :  { %v318_v18 = vmax.f32 %v288_v8, 0.0  ;;  %v280_v19 = vadd.f32 %v279_v62, %v109_v0 }
  0xde   :  { %v767_v63 = vpop.f32.mrf.mxu0 }
  0xdf   :  { %v301_v2 = vadd.f32 %v767_v63, %v134_v51  ;;  %v344_v25 = vpack.c.bf16 %v318_v18, %v317_v21  ;;  %v316_v26 = vmax.f32 %v280_v19, 0.0  ;;  %v309_v51 = vmax.f32 %v253_v40, 0.0 }
  0xe0   :  { %v292_v1 = vpop.f32.mrf.mxu0 }
  0xe1   :  { %v293_v5 = vadd.f32 %v292_v1, %v124_v49  ;;  %v321_v9 = vmax.f32 %v301_v2, 0.0  ;;  %v343_v32 = vpack.c.bf16 %v316_v26, %v315_v29  ;;  %v341_v49 = vpack.c.bf16 %v312_v39, %v311_v41  ;;  %v441_v2 = vpop.permute.xlu1 %440 }
  0xe2   :  { %v768_v4 = vpop.f32.mrf.mxu0  ;;  %v340_v53 = vpack.c.bf16 %v310_v43, %v309_v51 }
  0xe3   :  { %v304_v6 = vadd.f32 %v768_v4, %v139_v56  ;;  %v319_v14 = vmax.f32 %v293_v5, 0.0  ;;  %v840_v56 = vld [vmem:[%s1112_s3 + $0x20] sm:$0xff]   ;;  %v436_v4 = vpop.permute.xlu0 %435 }
  0xe4   :  { %v295_v7 = vpop.f32.mrf.mxu0 }
  0xe5   :  { %v322_v10 = vmax.f32 %v304_v6, 0.0  ;;  %v296_v11 = vadd.f32 %v295_v7, %v129_v54  ;;  %v307_v54 = vmax.f32 %v245_v52, 0.0  ;;  %v431_v7 = vpop.permute.xlu1 %430 }
  0xe7   :  { %v320_v15 = vmax.f32 %v296_v11, 0.0  ;;  %v346_v16 = vpack.c.bf16 %v322_v10, %v321_v9  ;;  %v339_v55 = vpack.c.bf16 %v308_v47, %v307_v54  ;;  %v426_v9 = vpop.permute.xlu0 %425 }
  0xe9   :  { %v345_v20 = vpack.c.bf16 %v320_v15, %v319_v14  ;;  %769 = vmatprep.subr.bf16.mxu1 %v346_v16  ;;  %v421_v12 = vpop.permute.xlu1 %420 }
  0xea   :  { %770 = vmatpush3.bf16.msra.mxu1 %v346_v16 }
  0xeb   :  { %771 = vmatprep.subr.bf16.mxu1 %v345_v20  ;;  %v416_v14 = vpop.permute.xlu0 %415 }
  0xed   :  { %v411_v18 = vpop.permute.xlu1 %410 }
  0xee   :  { %772 = vmatpush3.bf16.msra.mxu1 %v345_v20 }
  0xef   :  { %773 = vmatprep.subr.bf16.mxu1 %v344_v25  ;;  %v406_v21 = vpop.permute.xlu0 %405 }
  0xf1   :  { %v401_v30 = vpop.permute.xlu1 %400 }
  0xf2   :  { %774 = vmatpush3.bf16.msra.mxu1 %v344_v25 }
  0xf3   :  { %775 = vmatprep.subr.bf16.mxu1 %v343_v32  ;;  %v396_v33 = vpop.permute.xlu0 %395 }
  0xf5   :  { %v391_v39 = vpop.permute.xlu1 %390 }
  0xf6   :  { %776 = vmatpush3.bf16.msra.mxu1 %v343_v32 }
  0xf7   :  { %777 = vmatprep.subr.bf16.mxu1 %v342_v38  ;;  %v386_v43 = vpop.permute.xlu0 %385 }
  0xfa   :  { %778 = vmatpush3.bf16.msra.mxu1 %v342_v38 }
  0xfb   :  { %779 = vmatprep.subr.bf16.mxu1 %v341_v49 }
  0xfe   :  { %780 = vmatpush3.bf16.msra.mxu1 %v341_v49 }
  0xff   :  { %781 = vmatprep.subr.bf16.mxu1 %v340_v53 }
 0x102   :  { %782 = vmatpush3.bf16.msra.mxu1 %v340_v53  ;;  %v381_v53 = vpop.permute.xlu1 %380 }
 0x103   :  { %783 = vmatprep.subr.bf16.mxu1 %v339_v55 }
 0x106   :  { %784 = vmatpush3.bf16.msra.mxu1 %v339_v55  ;;  %v376_v55 = vpop.permute.xlu0 %375 }
 0x109   :  { %786 = vmatmul.mubr.bf16.vlgmr.msra.gmra.mxu1 %v837_v45 }
 0x10a   :  { %789 = vmatprep.mubr.bf16.mxu1 %v838_v48 }
 0x111   :  { %790 = vmatmul.mubr.bf16.gmra.mxu1 %v839_v46 }
 0x112   :  { %793 = vmatprep.mubr.bf16.mxu1 %v840_v56 }
 0x119   :  { %794 = vmatmul.mubr.bf16.gmra.mxu1 %v841_v57 }
 0x11a   :  { %797 = vmatprep.mubr.bf16.mxu1 %v842_v58  ;;  %v371_v58 = vpop.permute.xlu1 %370 }
 0x121   :  { %798 = vmatmul.mubr.bf16.gmra.mxu1 %v843_v59 }
 0x1c9   :  { %v1085_v61 = vpop.f32.mrf.mxu1 }
 0x1ca   :  { %v534_v56 = vadd.f32 %v1085_v61, %v376_v55 }
 0x1cb   :  { %v1087_v62 = vpop.f32.mrf.mxu1 }
 0x1cd   :  { %v788_v63 = vpop.f32.mrf.mxu1 }
 0x1ce   :  { %v537_v45 = vadd.f32 %v788_v63, %v381_v53 }
 0x1cf   :  { %v1089_v0 = vpop.f32.mrf.mxu1 }
 0x1d0   :  { %v591_v59 = vmax.f32 %v537_v45, 0.0 }
 0x1d1   :  { %v791_v1 = vpop.f32.mrf.mxu1 }
 0x1d2   :  { %v550_v44 = vadd.f32 %v791_v1, %v396_v33  ;;  %v529_v1 = vadd.f32 %v1089_v0, %v371_v58  ;;  %v604_v0 = vld [vmem:[%s1114_s5] sm:$0x3]  ;;  %s873_s5 = smov [#allocation2]  }
 0x1d3   :  { %v541_v3 = vpop.f32.mrf.mxu1  ;;  %s685_s22 = sshll.u32 %s873_s5, 4  ;;  %s686_s22 = int_to_ptr.vmem [resolvable:$true] %s685_s22 }
 0x1d4   :  { %v594_v47 = vmax.f32 %v550_v44, 0.0  ;;  %v542_v54 = vadd.f32 %v541_v3, %v386_v43  ;;  %v590_v3 = vmax.f32 %v534_v56, 0.0  ;;  %s848_s23 = scalar_lea.vmem %s686_s22, 64  ;;  %p853_p1 = scmp.lt.s32.totalorder %s686_s22, %s686_s22 }
 0x1d5   :  { %v792_v5 = vpop.f32.mrf.mxu1  ;;  %p849_p0 = scmp.ne.s32.totalorder %s686_s22, %s848_s23  ;;  %p854_p2 = scmp.lt.s32.totalorder %s848_s23, %s848_s23 }
 0x1d6   :  { %v553_v40 = vadd.f32 %v792_v5, %v401_v30  ;;  %v592_v57 = vmax.f32 %v542_v54, 0.0  ;;  %v606_v63 = vpack.c.bf16 %v591_v59, %v590_v3 }
 0x1d7   :  { %v544_v6 = vpop.f32.mrf.mxu1  ;;  %p855_p3 = por %p854_p2, %p853_p1 }
 0x1d8   :  { %v595_v50 = vmax.f32 %v553_v40, 0.0  ;;  %v545_v51 = vadd.f32 %v544_v6, %v391_v39  ;;  %v589_v6 = vmax.f32 %v529_v1, 0.0 }
 0x1d9   :  { %v795_v8 = vpop.f32.mrf.mxu1  ;;  %p856_p4 = pnand %p855_p3, %p849_p0 }
 0x1da   :  { %v566_v31 = vadd.f32 %v795_v8, %v416_v14  ;;  %v608_v48 = vpack.c.bf16 %v595_v50, %v594_v47  ;;  %v593_v46 = vmax.f32 %v545_v51, 0.0 }
 0x1db   :  { %v557_v10 = vpop.f32.mrf.mxu1 }
 0x1dc   :  { %v598_v37 = vmax.f32 %v566_v31, 0.0  ;;  %v558_v38 = vadd.f32 %v557_v10, %v406_v21 }
 0x1dd   :  { %v796_v11 = vpop.f32.mrf.mxu1 }
 0x1de   :  { %v569_v27 = vadd.f32 %v796_v11, %v421_v12  ;;  %v596_v49 = vmax.f32 %v558_v38, 0.0 }
 0x1df   :  { %v560_v13 = vpop.f32.mrf.mxu1 }
 0x1e0   :  { %v599_v34 = vmax.f32 %v569_v27, 0.0  ;;  %v561_v35 = vadd.f32 %v560_v13, %v411_v18 }
 0x1e1   :  { %v799_v15 = vpop.f32.mrf.mxu1 }
 0x1e2   :  { %v582_v17 = vadd.f32 %v799_v15, %v436_v4  ;;  %v610_v41 = vpack.c.bf16 %v599_v34, %v598_v37  ;;  %v597_v42 = vmax.f32 %v561_v35, 0.0  ;;  %v366_v4 = vpop.permute.xlu0 %365 }
 0x1e3   :  { %v573_v16 = vpop.f32.mrf.mxu1  ;;  %v526_v5 = vadd.f32 %v1087_v62, %v366_v4 }
 0x1e4   :  { %v602_v23 = vmax.f32 %v582_v17, 0.0  ;;  %v574_v24 = vadd.f32 %v573_v16, %v426_v9  ;;  %v609_v52 = vpack.c.bf16 %v597_v42, %v596_v49 }
 0x1e5   :  { %v800_v19 = vpop.f32.mrf.mxu1 }
 0x1e6   :  { %v585_v20 = vadd.f32 %v800_v19, %v441_v2  ;;  %v600_v32 = vmax.f32 %v574_v24, 0.0  ;;  %v607_v2 = vpack.c.bf16 %v593_v46, %v592_v57  ;;  %v617_v8 = vpop.permute.xlu0 %616 }
 0x1e7   :  { %v576_v22 = vpop.f32.mrf.mxu1 }
 0x1e8   :  { %v603_v25 = vmax.f32 %v585_v20, 0.0  ;;  %v577_v26 = vadd.f32 %v576_v22, %v431_v7  ;;  %v588_v7 = vmax.f32 %v526_v5, 0.0 }
 0x1ea   :  { %v612_v28 = vpack.c.bf16 %v603_v25, %v602_v23  ;;  %v601_v29 = vmax.f32 %v577_v26, 0.0  ;;  %v605_v61 = vpack.c.bf16 %v589_v6, %v588_v7 }
 0x1ec   :  { %802 = vmatpush3.bf16.msra.mxu0 %v612_v28  ;;  %v611_v36 = vpack.c.bf16 %v601_v29, %v600_v32 }
 0x1ed   :  { %803 = vmatprep.subr.bf16.mxu0 %v871_v60 }
 0x1f0   :  { %804 = vmatpush3.bf16.msra.mxu0 %v611_v36 }
 0x1f1   :  { %805 = vmatprep.subr.bf16.mxu0 %v871_v60 }
 0x1f4   :  { %806 = vmatpush3.bf16.msra.mxu0 %v610_v41 }
 0x1f5   :  { %807 = vmatprep.subr.bf16.mxu0 %v871_v60 }
 0x1f8   :  { %808 = vmatpush3.bf16.msra.mxu0 %v609_v52 }
 0x1f9   :  { %809 = vmatprep.subr.bf16.mxu0 %v871_v60 }
 0x1fc   :  { %810 = vmatpush3.bf16.msra.mxu0 %v608_v48 }
 0x1fd   :  { %811 = vmatprep.subr.bf16.mxu0 %v871_v60 }
 0x200   :  { %812 = vmatpush3.bf16.msra.mxu0 %v607_v2 }
 0x201   :  { %813 = vmatprep.subr.bf16.mxu0 %v871_v60 }
 0x204   :  { %814 = vmatpush3.bf16.msra.mxu0 %v606_v63 }
 0x205   :  { %815 = vmatprep.subr.bf16.mxu0 %v871_v60 }
 0x208   :  { %816 = vmatpush3.bf16.msra.mxu0 %v605_v61 }
 0x20b   :  { %818 = vmatmul.mubr.bf16.vlgmr.msra.gmra.mxu0 %v604_v0 }
 0x2cb   :  { %v653_v9 = vpop.f32.mrf.mxu0 }
 0x2cc   :  { %v654_v10 = vadd.f32 %v653_v9, %v617_v8 }
 0x2cd   :  { %v819_v62 = vpop.f32.mrf.mxu0 }
 0x2ce   :  { %v659_v11 = vsel %vm206_vm0, %v654_v10, -inf }
 0x2cf   :  { %v660_v12 = vrot.slane %v659_v11, 4  ;;  %v656_v13 = vpop.f32.mrf.mxu0 }
 0x2d1   :  { %v661_v14 = vmax.f32 %v659_v11, %v660_v12  ;;  %v820_v15 = vpop.f32.mrf.mxu0 }
 0x2d3   :  { %v662_v16 = vrot.slane %v661_v14, 2 }
 0x2d5   :  { %v663_v17 = vmax.f32 %v661_v14, %v662_v16 }
 0x2d7   :  { %v664_v60 = vrot.slane %v663_v17, 1 }
 0x2d9   :  { %v665_v18 = vmax.f32 %v663_v17, %v664_v60 }
 0x2db   :  { %v666_v19 = vsub.f32 %v654_v10, %v665_v18 }
 0x2dd   :  { %v667_v20 = vmul.f32 1.442695, %v666_v19 }
 0x2df   :  { %844 = vpow2.f32 %v667_v20 }
 0x2ec   :  { %v845_v21 = vpop.eup %844 }
 0x2ed   :  { %v669_v22 = vsel %vm206_vm0, %v845_v21, 0.0 }
 0x2ee   :  { %v670_v23 = vrot.slane %v669_v22, 4 }
 0x2f0   :  { %v671_v24 = vadd.f32 %v670_v23, %v669_v22 }
 0x2f2   :  { %v672_v25 = vrot.slane %v671_v24, 2 }
 0x2f4   :  { %v673_v26 = vadd.f32 %v672_v25, %v671_v24 }
 0x2f6   :  { %v674_v27 = vrot.slane %v673_v26, 1 }
 0x2f8   :  { %v675_v28 = vadd.f32 %v674_v27, %v673_v26 }
 0x2fa   :  { %846 = vrcp.f32 %v675_v28 }
 0x307   :  { %v847_v29 = vpop.eup %846 }
 0x308   :  { %v677_v30 = vmul.f32 %v847_v29, %v845_v21 }
 0x30a   :  { %678 = vst [vmem:[#allocation2] sm:$0xf] %v677_v30 }
 0x30b   :  { %859 = shalt.err (!%p856_p4)
}
 0x30c   :  { %688 = dma.vmem_to_hbm [thread:$0]  %s686_s22, 64, %s1116_s7, [#allocation3]  }
 0x30d   :  { %868 = dma.done.wait [#allocation3], 64  }
 0x30e   :  { %869 = vsyncadd [#allocation3], 4294967232 }
 0x30f   :  { %692 = vsyncpa [#allocation3], 1 }

</bundles_post_ra>
